<compile_context>
chip_gen: v7x
topology: tpu7x:2x2x1
jax: 0.10.0
libtpu: 0.0.40
codegen_flags: <defaults>
</compile_context>

<pallas_src>
import functools

import jax
import jax.numpy as jnp
from jax.experimental import pallas as pl
from jax.experimental.pallas import tpu as pltpu


# ----------------------------- Pallas kernel -------------------------------


def _linear_kernel(x_ref, w_ref, b_ref, out_ref):
    x = x_ref[...]
    w = w_ref[...]
    if x.dtype != w.dtype:                    # bf16 weights -> feed MXU in bf16
        x = x.astype(w.dtype)
    acc = jnp.dot(x, w, preferred_element_type=jnp.float32)
    out_ref[...] = (acc + b_ref[...]).astype(out_ref.dtype)


# ------------------------------- wrapper ------------------------------------

_GRIDLESS_VMEM_BUDGET = 8 << 20    # stay comfortably under every chip's scoped default
_GRID_VMEM_BUDGET = 16 << 20       # per-step budget for double-buffered blocks (v7x safe)


def _round_up(x, m):
    return -(-x // m) * m


def _auto_batch_tile(B, K, N, x_item, w_item):
    """Pick a batch tile: prefer an even 2-way split (one block per v7x TC),
    capped so double-buffered x/out blocks fit the VMEM budget."""
    weight_bytes = 2 * (K * N + N) * w_item            # weights/bias (double-buffered)
    per_row = 2 * (K * x_item + N * 4)                 # x block + f32 out block, x2 buffers
    max_rows = max(8, ((_GRID_VMEM_BUDGET - weight_bytes) // per_row) // 8 * 8)
    half = _round_up(pl.cdiv(B, 2), 8)
    if half <= max_rows:
        return int(half)
    return int(min(max_rows, 1024))


def _run_linear(x, w, b, *, batch_tile=None):
    """y = x @ w + b via one Pallas call.

    batch_tile=None  -> auto policy: gridless while it fits VMEM, otherwise a
                        ragged cdiv batch grid (parallel) with an auto tile.
    batch_tile=int   -> force the gridded path with that tile (testing / tuning).
    """
    B, K = x.shape
    N = w.shape[1]

    cost = pl.CostEstimate(
        flops=2 * B * K * N,
        transcendentals=0,
        bytes_accessed=(B * K * x.dtype.itemsize
                        + (K * N + N) * w.dtype.itemsize
                        + B * N * 4),
    )

    gridless_bytes = (B * K * x.dtype.itemsize
                      + (K * N + N) * w.dtype.itemsize
                      + B * N * 4)
    if batch_tile is None and gridless_bytes <= _GRIDLESS_VMEM_BUDGET:
        # Single block, exact shapes: full-array blocks satisfy the (8,128) rule,
        # no padding, no slicing, no grid-step overhead.
        def full(shape):
            return pl.BlockSpec(shape, lambda: (0,) * len(shape))

        return pl.pallas_call(
            _linear_kernel,
            out_shape=jax.ShapeDtypeStruct((B, N), jnp.float32),
            in_specs=[full(x.shape), full(w.shape), full(b.shape)],
            out_specs=full((B, N)),
            cost_estimate=cost,
        )(x, w, b)

    # Gridded path: ragged last block (no batch padding, OOB output rows masked).
    tile = batch_tile if batch_tile is not None else _auto_batch_tile(
        B, K, N, x.dtype.itemsize, w.dtype.itemsize)
    tile = int(max(8, min(_round_up(tile, 8), _round_up(B, 8))))
    grid = (pl.cdiv(B, tile),)

    return pl.pallas_call(
        _linear_kernel,
        out_shape=jax.ShapeDtypeStruct((B, N), jnp.float32),
        grid=grid,
        in_specs=[
            pl.BlockSpec((tile, K), lambda i: (i, 0)),
            pl.BlockSpec((K, N), lambda i: (0, 0)),   # weights stay resident
            pl.BlockSpec((1, N), lambda i: (0, 0)),   # bias stays resident
        ],
        out_specs=pl.BlockSpec((tile, N), lambda i: (i, 0)),
        compiler_params=pltpu.CompilerParams(dimension_semantics=("parallel",)),
        cost_estimate=cost,
    )(x, w, b)


@functools.partial(jax.jit, static_argnames=("batch_tile",))
def _forward_jit(x, w, b, batch_tile=None):
    return _run_linear(x, w, b, batch_tile=batch_tile)


# --------------------------- module (plain JAX glue) ------------------------


class SemanticClassifier:
    """JAX/Pallas port of Semantic_classifier (forward path only).

    The purely linear stack selected by type_pred is folded at init into one
    effective weight/bias (inference-only: per-layer grads are not preserved).
    """

    def __init__(self, vocab_size, embedding_size, rnn_h_size, data_size,
                 max_length, EOS_token, n_f, n_t, type_pred, *,
                 key, param_dtype=jnp.float32):
        self.data_size = data_size
        self.n_f = n_f
        self.n_t = n_t
        self.type_pred = type_pred
        # TODO(synk): embeddingTable / nn.RNN are only used by embed()/process_sentence(),
        # which forward() never calls; they are intentionally not ported.

        def init_linear(key, fan_in, fan_out):
            kw, kb = jax.random.split(key)
            bound = 1.0 / jnp.sqrt(jnp.float32(fan_in))
            # stored as [in, out] (== PyTorch weight transposed)
            w = jax.random.uniform(kw, (fan_in, fan_out), jnp.float32, -bound, bound)
            b = jax.random.uniform(kb, (1, fan_out), jnp.float32, -bound, bound)
            return w, b

        keys = jax.random.split(key, 6)
        self.w_f, self.b_f = init_linear(keys[0], data_size, n_f)
        self.w_t1, self.b_t1 = init_linear(keys[1], data_size, n_t)
        self.w_t2, self.b_t2 = init_linear(keys[2], data_size, n_t)
        self.w_ft1t2, self.b_ft1t2 = init_linear(keys[3], n_f + n_t + n_t, n_f * n_t * n_t)
        self.w_ft, self.b_ft = init_linear(keys[4], n_f + n_t, n_f * n_t)
        self.w_t, self.b_t = init_linear(keys[5], n_t + n_t, n_t * n_t)

        # ---- fold the linear stack for this type_pred into (w_eff, b_eff) ----
        tp = type_pred
        if tp in (1, 2):
            w1 = jnp.concatenate([self.w_f, self.w_t1, self.w_t2], axis=1)
            b1 = jnp.concatenate([self.b_f, self.b_t1, self.b_t2], axis=1)
            w2, b2 = self.w_ft1t2, self.b_ft1t2
        elif tp in (3, 4, 5):
            w1 = jnp.concatenate([self.w_f, self.w_t1], axis=1)
            b1 = jnp.concatenate([self.b_f, self.b_t1], axis=1)
            w2, b2 = self.w_ft, self.b_ft
        elif tp == 6:
            w1, b1, w2, b2 = self.w_f, self.b_f, None, None
        elif tp in (7, 8):
            w1 = jnp.concatenate([self.w_t1, self.w_t2], axis=1)
            b1 = jnp.concatenate([self.b_t1, self.b_t2], axis=1)
            w2, b2 = self.w_t, self.b_t
        elif tp in (9, 10, 11):
            w1, b1, w2, b2 = self.w_t1, self.b_t1, None, None
        else:
            raise ValueError(f"unsupported type_pred {tp}")

        if w2 is None:
            w_eff, b_eff = w1, b1
        else:
            # y = (x@w1 + b1)@w2 + b2 == x@(w1@w2) + (b1@w2 + b2)
            w_eff = w1 @ w2
            b_eff = b1 @ w2 + b2

        # Folded params are built (and dtype-cast) exactly once at init; no
        # per-forward padding or dtype conversion happens anywhere.
        self.w_eff = jax.device_put(w_eff.astype(param_dtype))
        self.b_eff = jax.device_put(b_eff.astype(jnp.float32))   # bias adds post-accumulate in f32

    def forward(self, x, *, batch_tile=None):
        return _forward_jit(x, self.w_eff, self.b_eff, batch_tile=batch_tile)

    # pure-JAX reference (unfolded f32, mirrors the PyTorch forward) for validation
    def forward_ref(self, x):
        lin = lambda v, w, b: v @ w + b
        out_f = lin(x, self.w_f, self.b_f)
        out_t1 = lin(x, self.w_t1, self.b_t1)
        out_t2 = lin(x, self.w_t2, self.b_t2)
        tp = self.type_pred
        if tp in (1, 2):
            return lin(jnp.concatenate([out_f, out_t1, out_t2], axis=1),
                       self.w_ft1t2, self.b_ft1t2)
        if tp in (3, 4, 5):
            return lin(jnp.concatenate([out_f, out_t1], axis=1), self.w_ft, self.b_ft)
        if tp == 6:
            return out_f
        if tp in (7, 8):
            return lin(jnp.concatenate([out_t1, out_t2], axis=1), self.w_t, self.b_t)
        return out_t1


# ------------------------------------ main ----------------------------------


if __name__ == "__main__":
    key = jax.random.PRNGKey(0)
    k_param, k_x, k_xl = jax.random.split(key, 3)

    batch = 8
    data_size = 32
    n_f = 8
    n_t = 8

    # Path 1: type_pred=1 (cat([f, t1, t2]) -> lin_ft1t2), folded to one matmul.
    # Small batch -> gridless single-block kernel, exact (B, 512) output.
    model = SemanticClassifier(
        vocab_size=16, embedding_size=16, rnn_h_size=16,
        data_size=data_size, max_length=8, EOS_token=0,
        n_f=n_f, n_t=n_t, type_pred=1, key=k_param,
    )
    x = jax.random.normal(k_x, (batch, data_size), jnp.float32)

    out = jax.block_until_ready(model.forward(x))
    ref = model.forward_ref(x)
    assert out.shape == (batch, n_f * n_t * n_t), out.shape
    assert jnp.allclose(out, ref, atol=1e-4, rtol=1e-4), "mismatch vs reference (tp=1)"

    # Same path, larger batch, forced batch grid to exercise the ragged
    # cdiv(320,128)=3-step gridded ("parallel") variant with a masked last block.
    xl = jax.random.normal(k_xl, (320, data_size), jnp.float32)
    out_l = jax.block_until_ready(model.forward(xl, batch_tile=128))
    ref_l = model.forward_ref(xl)
    assert out_l.shape == ref_l.shape, out_l.shape
    assert jnp.allclose(out_l, ref_l, atol=1e-4, rtol=1e-4), "mismatch vs reference (grid)"

    # Path 2: type_pred=6 (single first-layer linear, N=8 output, masked narrow store).
    model6 = SemanticClassifier(
        vocab_size=16, embedding_size=16, rnn_h_size=16,
        data_size=data_size, max_length=8, EOS_token=0,
        n_f=n_f, n_t=n_t, type_pred=6, key=k_param,
    )
    out6 = jax.block_until_ready(model6.forward(x))
    ref6 = model6.forward_ref(x)
    assert out6.shape == (batch, n_f), out6.shape
    assert jnp.allclose(out6, ref6, atol=1e-5, rtol=1e-5), "mismatch vs reference (tp=6)"

    # Optional bf16 weights (f32 accumulate) — fewer MXU passes, half the weight DMA.
    model_bf16 = SemanticClassifier(
        vocab_size=16, embedding_size=16, rnn_h_size=16,
        data_size=data_size, max_length=8, EOS_token=0,
        n_f=n_f, n_t=n_t, type_pred=1, key=k_param, param_dtype=jnp.bfloat16,
    )
    out_bf = jax.block_until_ready(model_bf16.forward(x))
    assert out_bf.shape == (batch, n_f * n_t * n_t), out_bf.shape
    assert jnp.allclose(out_bf, ref, atol=5e-2, rtol=5e-2), "mismatch vs reference (bf16)"

    print("KERNEL_OK")
</pallas_src>

<mosaic_0001>
module attributes {stable_mosaic.version = 11 : i64} {
  func.func @_linear_kernel(%arg0: memref<8x32xf32, #tpu.memory_space<vmem>>, %arg1: memref<32x512xf32, #tpu.memory_space<vmem>>, %arg2: memref<1x512xf32, #tpu.memory_space<vmem>>, %arg3: memref<8x512xf32, #tpu.memory_space<vmem>>) attributes {dimension_semantics = [], scalar_prefetch = 0 : i64, scratch_operands = 0 : i64, tpu.core_type = #tpu.core_type<tc>} {
    %c0 = arith.constant 0 : index
    %c0_0 = arith.constant 0 : index
    %0 = vector.load %arg0[%c0, %c0_0] : memref<8x32xf32, #tpu.memory_space<vmem>>, vector<8x32xf32>
    %c0_1 = arith.constant 0 : index
    %c0_2 = arith.constant 0 : index
    %1 = vector.load %arg1[%c0_1, %c0_2] : memref<32x512xf32, #tpu.memory_space<vmem>>, vector<32x512xf32>
    %cst = arith.constant dense<0.000000e+00> : vector<8x512xf32>
    %2 = tpu.matmul %0, %1, %cst {dimension_numbers = #tpu.dot_dimension_numbers<[1], [0], [0], [1], [0, 0, 1, 1], [], []>} : vector<8x32xf32>, vector<32x512xf32>, vector<8x512xf32> -> vector<8x512xf32>
    %c0_3 = arith.constant 0 : index
    %c0_4 = arith.constant 0 : index
    %3 = vector.load %arg2[%c0_3, %c0_4] : memref<1x512xf32, #tpu.memory_space<vmem>>, vector<1x512xf32>
    %4 = vector.broadcast %3 : vector<1x512xf32> to vector<8x512xf32>
    %5 = arith.addf %2, %4 : vector<8x512xf32>
    %c0_5 = arith.constant 0 : index
    %c0_6 = arith.constant 0 : index
    %6 = vector.load %arg3[%c0_5, %c0_6] : memref<8x512xf32, #tpu.memory_space<vmem>>, vector<8x512xf32>
    tpu.vector_store %arg3[%c0_5, %c0_6], %5 {strides = array<i32>} : memref<8x512xf32, #tpu.memory_space<vmem>>, vector<8x512xf32>,
    return
  }
}

</mosaic_0001>

<bundles_post_ra>
// kernel: _forward_jit.1
= control target key start
LH: loop header
LB: loop body
LE: loop exit
PB: predicated region body
PF: predicated region fallthrough
CT: control target
= control target key end

     0   :  { %8 = vsyncpa [#allocation3], 0  ;;  %s414_s0 = inlined_call_operand.hbm [shape: f32[8,32], index: 0, kind: input, shape index: {}]   ;;  %s415_s1 = inlined_call_operand.hbm [shape: f32[32,512], index: 1, kind: input, shape index: {}]   ;;  %s416_s2 = inlined_call_operand.vmem [shape: f32[1,512], index: 2, kind: input, shape index: {}]   ;;  %s417_s3 = inlined_call_operand.hbm [shape: f32[8,512], index: 3, kind: output, shape index: {}]  }
   0x1   :  { %9 = vsyncpa [#allocation6], 0 }
   0x2   :  { %10 = vsyncpa [#allocation4], 0  ;;  %s342_s12 = smov [#allocation2]   ;;  %s343_s14 = smov [#allocation5]  }
   0x3   :  { %s17_s13 = sshll.u32 %s342_s12, 4  ;;  %s26_s15 = sshll.u32 %s343_s14, 4  ;;  %s18_s13 = int_to_ptr.vmem [resolvable:$true] %s17_s13  ;;  %s368_s15 = int_to_ptr.vmem [resolvable:$true] %s26_s15 }
   0x4   :  { %s270_s18 = scalar_lea.hbm %s414_s0, 128 }
   0x5   :  { %p271_p0 = scmp.ne.s32.totalorder %s414_s0, %s270_s18  ;;  %p274_p1 = scmp.lt.u32.totalorder %s270_s18, %s414_s0 }
   0x7   :  { %p276_p2 = pnand %p274_p1, %p271_p0 }
   0x9   :  { %279 = shalt.err (!%p276_p2)
}
   0xa   :  { %s280_s23 = scalar_lea.vmem %s18_s13, 128  ;;  %p285_p4 = scmp.lt.s32.totalorder %s18_s13, %s18_s13 }
   0xb   :  { %p281_p3 = scmp.ne.s32.totalorder %s18_s13, %s280_s23  ;;  %p286_p5 = scmp.lt.s32.totalorder %s280_s23, %s280_s23 }
   0xd   :  { %p287_p6 = por %p286_p5, %p285_p4 }
   0xf   :  { %p288_p7 = pnand %p287_p6, %p281_p3 }
  0x11   :  { %291 = shalt.err (!%p288_p7)
}
  0x12   :  { %20 = dma.hbm_to_vmem [thread:$0]  %s414_s0, 128, %s18_s13, [#allocation3]  }
  0x13   :  { %s292_s28 = scalar_lea.hbm %s415_s1, 2048 }
  0x14   :  { %p293_p8 = scmp.ne.s32.totalorder %s415_s1, %s292_s28  ;;  %p296_p9 = scmp.lt.u32.totalorder %s292_s28, %s415_s1 }
  0x16   :  { %p298_p10 = pnand %p296_p9, %p293_p8 }
  0x18   :  { %301 = shalt.err (!%p298_p10)
}
  0x19   :  { %s302_s6 = scalar_lea.vmem %s368_s15, 2048  ;;  %p307_p12 = scmp.lt.s32.totalorder %s368_s15, %s368_s15 }
  0x1a   :  { %p303_p11 = scmp.ne.s32.totalorder %s368_s15, %s302_s6  ;;  %p308_p13 = scmp.lt.s32.totalorder %s302_s6, %s302_s6 }
  0x1c   :  { %p309_p0 = por %p308_p13, %p307_p12 }
  0x1e   :  { %p310_p1 = pnand %p309_p0, %p303_p11 }
  0x20   :  { %313 = shalt.err (!%p310_p1)
}
  0x21   :  { %s344_s0 = smov 512   ;;  %s345_s7 = smov 32  }
  0x22   :  { %32 = dma.hbm_to_vmem [thread:$0]  %s415_s1, 2048, %s368_s15, [#allocation6], %s344_s0, %s344_s0, %s345_s7  }
  0x23   :  { %336 = dma.done.wait [#allocation3], 128  }
  0x24   :  { %337 = vsyncadd [#allocation3], 4294967168 }
  0x25   :  { %338 = dma.done.wait [#allocation6], 2048  }
  0x26   :  { %339 = vsyncadd [#allocation6], 4294965248  ;;  %v346_v0 = vmov 0.0   ;;  %v43_v1 = vld [vmem:[#allocation5 + $0x8] sm:$0xff]  ;;  %v45_v3 = vld [vmem:[#allocation5 + $0x18] sm:$0xff]  ;;  %vm80_vm0 = vcmask 261120   ;;  %v60_v26 = vlaneseq }
  0x27   :  { %148 = vmatprep.mubr.f32.mxu0 %v346_v0  ;;  %219 = vmatprep.mubr.f32.mxu1 %v346_v0  ;;  %v47_v2 = vld [vmem:[#allocation5 + $0x28] sm:$0xff]  ;;  %v49_v5 = vld [vmem:[#allocation5 + $0x38] sm:$0xff]  ;;  %v42_v6 = vld [vmem:[#allocation5] sm:$0xff]  ;;  %s347_s11 = smov [#allocation7]  }
  0x28   :  { %v248_v4 = vpack.c.bf16 %v47_v2, %v43_v1  ;;  %v46_v7 = vld [vmem:[#allocation5 + $0x20] sm:$0xff]  ;;  %v256_v8 = vpack.c.bf16 %v49_v5, %v45_v3  ;;  %v44_v10 = vld [vmem:[#allocation5 + $0x10] sm:$0xff]  ;;  %v51_v12 = vld [vmem:[#allocation5 + $0x48] sm:$0xff]  ;;  %v61_v27 = vshrl.u32 %v60_v26, 7  ;;  %s236_s12 = sshll.u32 %s347_s11, 4  ;;  %s237_s12 = int_to_ptr.vmem [resolvable:$true] %s236_s12 }
  0x29   :  { %v250_v9 = vpack.c.bf16 %v46_v7, %v42_v6  ;;  %v48_v11 = vld [vmem:[#allocation5 + $0x30] sm:$0xff]  ;;  %v55_v14 = vld [vmem:[#allocation5 + $0x68] sm:$0xff]  ;;  %v53_v15 = vld [vmem:[#allocation5 + $0x58] sm:$0xff]  ;;  %p319_p3 = scmp.lt.s32.totalorder %s237_s12, %s237_s12 }
  0x2a   :  { %249 = vmatprep.subr.bf16.mxu0 %v248_v4  ;;  %v258_v13 = vpack.c.bf16 %v48_v11, %v44_v10  ;;  %v57_v16 = vld [vmem:[#allocation5 + $0x78] sm:$0xff]  ;;  %257 = vmatprep.subr.bf16.mxu1 %v256_v8  ;;  %v252_v17 = vpack.c.bf16 %v55_v14, %v51_v12  ;;  %v50_v19 = vld [vmem:[#allocation5 + $0x40] sm:$0xff]  ;;  %v52_v21 = vld [vmem:[#allocation5 + $0x50] sm:$0xff]  ;;  %v62_v28 = vsub.s32 0, %v61_v27  ;;  %v70_v30 = vsub.s32 2, %v61_v27 }
  0x2b   :  { %251 = vmatpush1.bf16.msra.mxu0 %v250_v9  ;;  %v260_v18 = vpack.c.bf16 %v57_v16, %v53_v15  ;;  %v54_v20 = vld [vmem:[#allocation5 + $0x60] sm:$0xff]  ;;  %v56_v23 = vld [vmem:[#allocation5 + $0x70] sm:$0xff]  ;;  %v41_v25 = vld [vmem:[#allocation2] sm:$0xff]  ;;  %v66_v31 = vsub.s32 1, %v61_v27  ;;  %v74_v32 = vsub.s32 3, %v61_v27 }
  0x2c   :  { %259 = vmatpush1.bf16.msra.mxu1 %v258_v13  ;;  %v254_v22 = vpack.c.bf16 %v54_v20, %v50_v19  ;;  %253 = vmatprep.subr.bf16.mxu0 %v252_v17  ;;  %v262_v24 = vpack.c.bf16 %v56_v23, %v52_v21  ;;  %v58_v29 = vld [vmem:[%s416_s2] sm:$0xf]  ;;  %s314_s2 = scalar_lea.vmem %s237_s12, 512 }
  0x2d   :  { %261 = vmatprep.subr.bf16.mxu1 %v260_v18  ;;  %v63_v33 = vrot.slane %v58_v29, %v62_v28  ;;  %v71_v34 = vrot.slane %v58_v29, %v70_v30  ;;  %v67_v35 = vrot.slane %v58_v29, %v66_v31  ;;  %v75_v36 = vrot.slane %v58_v29, %v74_v32  ;;  %p315_p2 = scmp.ne.s32.totalorder %s237_s12, %s314_s2  ;;  %p320_p4 = scmp.lt.s32.totalorder %s314_s2, %s314_s2 }
  0x2f   :  { %255 = vmatpush1.bf16.msra.mxu0 %v254_v22  ;;  %p321_p5 = por %p320_p4, %p319_p3 }
  0x30   :  { %263 = vmatpush1.bf16.msra.mxu1 %v262_v24 }
  0x31   :  { %p322_p6 = pnand %p321_p5, %p315_p2 }
  0x32   :  { %246 = vmatmul.mubr.msk.f32.vlgmr.msra.gmra.mrb[0].mxu0 %vm80_vm0, %v41_v25 }
  0x33   :  { %247 = vmatmul.mubr.msk.f32.vlgmr.msra.gmra.mrb[0].mxu1 %vm80_vm0, %v41_v25 }
 0x105   :  { %v150_v37 = vpop.f32.mrb[0].mxu0 }
 0x106   :  { %v151_v38 = vadd.f32 %v150_v37, %v63_v33  ;;  %v221_v39 = vpop.f32.mrb[0].mxu1  ;;  %v152_v40 = vpop.f32.mrb[1].mxu0 }
 0x107   :  { %v222_v41 = vadd.f32 %v221_v39, %v71_v34  ;;  %v153_v42 = vadd.f32 %v152_v40, %v67_v35  ;;  %v223_v43 = vpop.f32.mrb[1].mxu1 }
 0x108   :  { %226 = vst [vmem:[#allocation7] sm:$0xff] %v151_v38  ;;  %v224_v44 = vadd.f32 %v223_v43, %v75_v36 }
 0x109   :  { %228 = vst [vmem:[#allocation7 + $0x10] sm:$0xff] %v222_v41  ;;  %227 = vst [vmem:[#allocation7 + $0x8] sm:$0xff] %v153_v42 }
 0x10a   :  { %229 = vst [vmem:[#allocation7 + $0x18] sm:$0xff] %v224_v44 }
 0x10b   :  { %325 = shalt.err (!%p322_p6)
}
 0x10c   :  { %s326_s15 = scalar_lea.hbm %s417_s3, 512 }
 0x10d   :  { %p327_p7 = scmp.ne.s32.totalorder %s417_s3, %s326_s15  ;;  %p330_p8 = scmp.lt.u32.totalorder %s326_s15, %s417_s3 }
 0x10f   :  { %p332_p9 = pnand %p330_p8, %p327_p7 }
 0x111   :  { %335 = shalt.err (!%p332_p9)
}
 0x112   :  { %239 = dma.vmem_to_hbm [thread:$0]  %s237_s12, 512, %s417_s3, [#allocation4]  }
 0x113   :  { %340 = dma.done.wait [#allocation4], 512  }
 0x114   :  { %341 = vsyncadd [#allocation4], 4294966784 }
 0x115   :  { %243 = vsyncpa [#allocation3], 1 }
 0x116   :  { %244 = vsyncpa [#allocation6], 1 }
 0x117   :  { %245 = vsyncpa [#allocation4], 1 }

</bundles_post_ra>
